<compile_context>
chip_gen: v6e
topology: v6e:2x2x1
jax: 0.10.0
libtpu: 0.0.40
codegen_flags: <defaults>
</compile_context>

<pallas_src>
import functools
import math

import jax
import jax.numpy as jnp
from jax.experimental import pallas as pl
from jax.experimental.pallas import tpu as pltpu

LANE = 128                       # vreg lane width
NEG_BIG = -1e30                  # finite "-inf" for masked logit lanes
VMEM_LIMIT_BYTES = 48 * 1024 * 1024   # explicit scoped limit; safe headroom on
                                       # v5e/v6e (128 MiB) and v7x (64 MiB phys)


# ----------------------------------------------------------------------------
# helpers
# ----------------------------------------------------------------------------
def _round_up(n, m):
    return ((n + m - 1) // m) * m


def _pad_axis(x, target, axis):
    pad = target - x.shape[axis]
    if pad <= 0:
        return x
    widths = [(0, 0)] * x.ndim
    widths[axis] = (0, pad)
    return jnp.pad(x, widths)


def _dimension_semantics():
    """Row axis parallel (explicit dual-TC split on v7x); K-reduction arbitrary."""
    kind = ""
    try:
        kind = jax.devices()[0].device_kind.lower()
    except Exception:
        pass
    if "v7" in kind or "7x" in kind:
        row = pltpu.CORE_PARALLEL          # 2 TensorCores per chip on v7x
    else:
        row = pltpu.PARALLEL               # no-op on single-TC v5e/v6e
    return (row, pltpu.ARBITRARY)


# ----------------------------------------------------------------------------
# Streaming propagation kernels.
# One (TM, TK) tile of A_hat per grid step; f32 VMEM accumulator over the K
# (column) axis; bias + activation only in the finalize branch (k == last).
# ----------------------------------------------------------------------------
def propagate_relu_kernel(a_ref, xw_ref, b_ref, o_ref, acc_ref):
    k = pl.program_id(1)

    @pl.when(k == 0)
    def _():
        acc_ref[...] = jnp.zeros_like(acc_ref)

    acc_ref[...] += jnp.dot(a_ref[...], xw_ref[...],
                            preferred_element_type=jnp.float32)

    @pl.when(k == pl.num_programs(1) - 1)
    def _():
        h = jnp.maximum(acc_ref[...] + b_ref[...], 0.0)   # bias + ReLU in f32
        o_ref[...] = h.astype(o_ref.dtype)                # bf16 for layer-2 reuse


def propagate_logsoftmax_kernel(a_ref, hw_ref, b_ref, o_ref, acc_ref, *, out_ch):
    k = pl.program_id(1)

    @pl.when(k == 0)
    def _():
        acc_ref[...] = jnp.zeros_like(acc_ref)

    acc_ref[...] += jnp.dot(a_ref[...], hw_ref[...],
                            preferred_element_type=jnp.float32)

    @pl.when(k == pl.num_programs(1) - 1)
    def _():
        z = acc_ref[...] + b_ref[...]
        # mask padded logit lanes, then numerically stable log_softmax (dim=1)
        lane = jax.lax.broadcasted_iota(jnp.int32, z.shape, 1)
        valid = lane < out_ch
        z = jnp.where(valid, z, NEG_BIG)
        m = jnp.max(z, axis=1, keepdims=True)
        e = jnp.exp(z - m)                     # padded lanes underflow to 0
        s = jnp.sum(e, axis=1, keepdims=True)
        out = z - m - jnp.log(s)
        o_ref[...] = jnp.where(valid, out, 0.0)


def _propagate(kernel, a_p, xw_p, b_p, out_dtype, tile_m, tile_k, cparams):
    """out = finalize(A_hat @ xw + b), K-tiled accumulation over A columns."""
    n_pad = a_p.shape[0]
    f_pad = xw_p.shape[1]
    grid = (n_pad // tile_m, n_pad // tile_k)
    return pl.pallas_call(
        kernel,
        out_shape=jax.ShapeDtypeStruct((n_pad, f_pad), out_dtype),
        grid=grid,
        in_specs=[
            pl.BlockSpec((tile_m, tile_k), lambda i, k: (i, k)),   # A tile
            pl.BlockSpec((tile_k, f_pad), lambda i, k: (k, 0)),    # (x@W) tile
            pl.BlockSpec((1, f_pad), lambda i, k: (0, 0)),         # bias (tiny)
        ],
        out_specs=pl.BlockSpec((tile_m, f_pad), lambda i, k: (i, 0)),
        scratch_shapes=[pltpu.VMEM((tile_m, f_pad), jnp.float32)],
        compiler_params=cparams,
    )(a_p, xw_p, b_p)


# ----------------------------------------------------------------------------
# Wrapper: pad to TPU-friendly shapes, precompute x@W, stream A_hat, slice back
# ----------------------------------------------------------------------------
def gnn_forward(a_hat, x, w1, b1, w2, b2, *, tile_m=512, tile_k=512):
    """a_hat: [N,N], x: [N,F_in], w1: [F_in,H], b1: [1,H], w2: [H,C], b2: [1,C]"""
    N = x.shape[0]
    F_in, H = w1.shape
    C = w2.shape[1]

    f_pad = _round_up(F_in, LANE)
    h_pad = _round_up(H, LANE)
    c_pad = _round_up(C, LANE)

    # shrink tiles for tiny graphs (avoid silly padding); stays (8,128)-legal
    tile_m = min(tile_m, _round_up(N, LANE))
    tile_k = min(tile_k, _round_up(N, LANE))
    n_pad = _round_up(N, (tile_m * tile_k) // math.gcd(tile_m, tile_k))

    # Zero-pad; MXU operands in bf16 (f32 accumulation inside the kernels).
    a_p = _pad_axis(_pad_axis(a_hat, n_pad, 0), n_pad, 1).astype(jnp.bfloat16)
    x_p = _pad_axis(_pad_axis(x, n_pad, 0), f_pad, 1).astype(jnp.bfloat16)
    w1_p = _pad_axis(_pad_axis(w1, f_pad, 0), h_pad, 1).astype(jnp.bfloat16)
    b1_p = _pad_axis(b1, h_pad, 1).astype(jnp.float32)
    w2_p = _pad_axis(_pad_axis(w2, h_pad, 0), c_pad, 1).astype(jnp.bfloat16)
    b2_p = _pad_axis(b2, c_pad, 1).astype(jnp.float32)

    cparams = pltpu.CompilerParams(
        dimension_semantics=_dimension_semantics(),
        vmem_limit_bytes=VMEM_LIMIT_BYTES,
    )

    # ---- layer 1: h = relu(A @ (x @ W1) + b1) ------------------------------
    # Feature transform precomputed once (tiny matmul, plain XLA); the streamed
    # kernel is then a single A-tile accumulate per grid step.
    xw1 = jnp.dot(x_p, w1_p, preferred_element_type=jnp.float32).astype(jnp.bfloat16)
    h = _propagate(propagate_relu_kernel, a_p, xw1, b1_p, jnp.bfloat16,
                   tile_m, tile_k, cparams)

    # ---- layer 2: out = log_softmax(A @ (h @ W2) + b2) ----------------------
    hw2 = jnp.dot(h, w2_p, preferred_element_type=jnp.float32).astype(jnp.bfloat16)
    out = _propagate(functools.partial(propagate_logsoftmax_kernel, out_ch=C),
                     a_p, hw2, b2_p, jnp.float32, tile_m, tile_k, cparams)

    return out[:N, :C]


# ----------------------------------------------------------------------------
# Plain-JAX glue: gcn_norm -> dense normalized adjacency (cached=True style)
# ----------------------------------------------------------------------------
def gcn_norm_dense(edge_index, edge_weight, num_nodes, dtype=jnp.float32):
    row, col = edge_index[0], edge_index[1]
    num_edges = row.shape[0]
    if edge_weight is None:
        edge_weight = jnp.ones((num_edges,), dtype=dtype)

    # add self loops with fill value 1.0 (inputs are built with no self loops)
    loop = jnp.arange(num_nodes, dtype=row.dtype)
    row = jnp.concatenate([row, loop])
    col = jnp.concatenate([col, loop])
    ew = jnp.concatenate([edge_weight, jnp.ones((num_nodes,), dtype=dtype)])

    # deg = scatter_add(edge_weight, col)
    deg = jnp.zeros((num_nodes,), dtype=dtype).at[col].add(ew)
    deg_inv_sqrt = jnp.where(deg > 0, jax.lax.rsqrt(deg), 0.0)
    norm = deg_inv_sqrt[row] * ew * deg_inv_sqrt[col]

    # A_hat[target, source] so that out = A_hat @ x aggregates source features
    a_hat = jnp.zeros((num_nodes, num_nodes), dtype=dtype).at[col, row].add(norm)
    return a_hat


def glorot_init(key, in_dim, out_dim):
    stdv = math.sqrt(6.0 / (in_dim + out_dim))
    return jax.random.uniform(key, (in_dim, out_dim), jnp.float32, -stdv, stdv)


def gnn_reference(a_hat, x, w1, b1, w2, b2):
    h = jnp.maximum(a_hat @ (x @ w1) + b1, 0.0)
    z = a_hat @ (h @ w2) + b2
    return jax.nn.log_softmax(z, axis=1)


# ----------------------------------------------------------------------------
# Main
# ----------------------------------------------------------------------------
if __name__ == "__main__":
    N = 16            # number of graph nodes
    IN_CH = 8         # in_channels
    INTER_CH = 32     # inter_channels
    OUT_CH = 4        # out_channels

    key = jax.random.PRNGKey(0)
    kx, kw1, kw2 = jax.random.split(key, 3)

    # node features (data.x)
    x = jax.random.normal(kx, (N, IN_CH), jnp.float32)

    # deterministic ring graph, both directions, no self loops (data.edge_index)
    src = jnp.arange(N, dtype=jnp.int32)
    dst = (src + 1) % N
    edge_index = jnp.stack(
        [jnp.concatenate([src, dst]), jnp.concatenate([dst, src])], axis=0
    )
    edge_weight = None  # data.edge_attr is None

    # parameters (glorot weights, zero biases) — deterministic in-script init
    w1 = glorot_init(kw1, IN_CH, INTER_CH)
    b1 = jnp.zeros((1, INTER_CH), jnp.float32)
    w2 = glorot_init(kw2, INTER_CH, OUT_CH)
    b2 = jnp.zeros((1, OUT_CH), jnp.float32)

    # normalized adjacency (gcn_norm), shared by both layers (cached=True)
    a_hat = gcn_norm_dense(edge_index, edge_weight, N)

    out = gnn_forward(a_hat, x, w1, b1, w2, b2)
    jax.block_until_ready(out)

    # sanity 1: log_softmax rows sum (in prob space) to 1
    row_sums = jnp.sum(jnp.exp(out), axis=1)
    assert out.shape == (N, OUT_CH)
    assert bool(jnp.all(jnp.abs(row_sums - 1.0) < 1e-4))

    # sanity 2: matches the f32 plain-JAX reference (bf16 MXU tolerance)
    ref = gnn_reference(a_hat, x, w1, b1, w2, b2)
    assert bool(jnp.max(jnp.abs(out - ref)) < 1e-1)

    print("KERNEL_OK")
</pallas_src>

<mosaic_0001>
module attributes {stable_mosaic.version = 11 : i64} {
  func.func @propagate_relu_kernel(%arg0: i32, %arg1: i32, %arg2: memref<128x128xbf16, #tpu.memory_space<vmem>>, %arg3: memref<128x128xbf16, #tpu.memory_space<vmem>>, %arg4: memref<1x128xf32, #tpu.memory_space<vmem>>, %arg5: memref<128x128xbf16, #tpu.memory_space<vmem>>, %arg6: memref<128x128xf32, #tpu.memory_space<vmem>>) attributes {dimension_semantics = [#tpu.dimension_semantics<parallel>, #tpu.dimension_semantics<arbitrary>], iteration_bounds = array<i64: 1, 1>, scalar_prefetch = 0 : i64, scratch_operands = 1 : i64, tpu.core_type = #tpu.core_type<tc>, window_params = [{transform_indices = @transform_0, window_bounds = array<i64: 128, 128>}, {transform_indices = @transform_1, window_bounds = array<i64: 128, 128>}, {pipeline_mode = #tpu.pipeline_mode<synchronous>, transform_indices = @transform_2, window_bounds = array<i64: 1, 128>}, {transform_indices = @transform_3, window_bounds = array<i64: 128, 128>}]} {
    %c0_i32 = arith.constant 0 : i32
    %0 = arith.cmpi eq, %arg1, %c0_i32 : i32
    %1 = arith.extui %0 : i1 to i32
    %c0_i32_0 = arith.constant 0 : i32
    %2 = arith.cmpi ne, %1, %c0_i32_0 : i32
    scf.if %2 {
      %cst_10 = arith.constant 0.000000e+00 : f32
      %12 = vector.broadcast %cst_10 : f32 to vector<128x128xf32>
      %c0_11 = arith.constant 0 : index
      %c0_12 = arith.constant 0 : index
      %13 = vector.load %arg6[%c0_11, %c0_12] : memref<128x128xf32, #tpu.memory_space<vmem>>, vector<128x128xf32>
      tpu.vector_store %arg6[%c0_11, %c0_12], %12 {strides = array<i32>} : memref<128x128xf32, #tpu.memory_space<vmem>>, vector<128x128xf32>,
    } else {
    }
    %c0 = arith.constant 0 : index
    %c0_1 = arith.constant 0 : index
    %3 = vector.load %arg6[%c0, %c0_1] : memref<128x128xf32, #tpu.memory_space<vmem>>, vector<128x128xf32>
    %c0_2 = arith.constant 0 : index
    %c0_3 = arith.constant 0 : index
    %4 = vector.load %arg2[%c0_2, %c0_3] : memref<128x128xbf16, #tpu.memory_space<vmem>>, vector<128x128xbf16>
    %c0_4 = arith.constant 0 : index
    %c0_5 = arith.constant 0 : index
    %5 = vector.load %arg3[%c0_4, %c0_5] : memref<128x128xbf16, #tpu.memory_space<vmem>>, vector<128x128xbf16>
    %cst = arith.constant dense<0.000000e+00> : vector<128x128xf32>
    %6 = tpu.matmul %4, %5, %cst {dimension_numbers = #tpu.dot_dimension_numbers<[1], [0], [0], [1], [0, 0, 1, 1], [], []>} : vector<128x128xbf16>, vector<128x128xbf16>, vector<128x128xf32> -> vector<128x128xf32>
    %7 = arith.addf %3, %6 : vector<128x128xf32>
    %c0_6 = arith.constant 0 : index
    %c0_7 = arith.constant 0 : index
    %8 = vector.load %arg6[%c0_6, %c0_7] : memref<128x128xf32, #tpu.memory_space<vmem>>, vector<128x128xf32>
    tpu.vector_store %arg6[%c0_6, %c0_7], %7 {strides = array<i32>} : memref<128x128xf32, #tpu.memory_space<vmem>>, vector<128x128xf32>,
    %c0_i32_8 = arith.constant 0 : i32
    %9 = arith.cmpi eq, %arg1, %c0_i32_8 : i32
    %10 = arith.extui %9 : i1 to i32
    %c0_i32_9 = arith.constant 0 : i32
    %11 = arith.cmpi ne, %10, %c0_i32_9 : i32
    scf.if %11 {
      %c0_10 = arith.constant 0 : index
      %c0_11 = arith.constant 0 : index
      %12 = vector.load %arg6[%c0_10, %c0_11] : memref<128x128xf32, #tpu.memory_space<vmem>>, vector<128x128xf32>
      %c0_12 = arith.constant 0 : index
      %c0_13 = arith.constant 0 : index
      %13 = vector.load %arg4[%c0_12, %c0_13] : memref<1x128xf32, #tpu.memory_space<vmem>>, vector<1x128xf32>
      %14 = vector.broadcast %13 : vector<1x128xf32> to vector<128x128xf32>
      %15 = arith.addf %12, %14 : vector<128x128xf32>
      %cst_14 = arith.constant 0.000000e+00 : f32
      %16 = vector.broadcast %cst_14 : f32 to vector<128x128xf32>
      %17 = arith.maximumf %15, %16 : vector<128x128xf32>
      %18 = arith.truncf %17 : vector<128x128xf32> to vector<128x128xbf16>
      %c0_15 = arith.constant 0 : index
      %c0_16 = arith.constant 0 : index
      %19 = vector.load %arg5[%c0_15, %c0_16] : memref<128x128xbf16, #tpu.memory_space<vmem>>, vector<128x128xbf16>
      tpu.vector_store %arg5[%c0_15, %c0_16], %18 {strides = array<i32>} : memref<128x128xbf16, #tpu.memory_space<vmem>>, vector<128x128xbf16>,
    } else {
    }
    return
  }
  func.func @transform_0(%arg0: i32, %arg1: i32) -> (i32, i32) {
    %c0_i32 = arith.constant 0 : i32
    return %arg0, %arg1 : i32, i32
  }
  func.func @transform_1(%arg0: i32, %arg1: i32) -> (i32, i32) {
    %c0_i32 = arith.constant 0 : i32
    %c0_i32_0 = arith.constant 0 : i32
    return %arg1, %c0_i32 : i32, i32
  }
  func.func @transform_2(%arg0: i32, %arg1: i32) -> (i32, i32) {
    %c0_i32 = arith.constant 0 : i32
    %c0_i32_0 = arith.constant 0 : i32
    %c0_i32_1 = arith.constant 0 : i32
    return %c0_i32, %c0_i32_0 : i32, i32
  }
  func.func @transform_3(%arg0: i32, %arg1: i32) -> (i32, i32) {
    %c0_i32 = arith.constant 0 : i32
    %c0_i32_0 = arith.constant 0 : i32
    return %arg0, %c0_i32 : i32, i32
  }
}

</mosaic_0001>

<bundles_post_ra>
// kernel: tpu_custom_call.1
= control target key start
LH: loop header
LB: loop body
LE: loop exit
PB: predicated region body
PF: predicated region fallthrough
CT: control target
= control target key end

     0   :  { %8 = vsyncpa [#allocation4], 0  ;;  %s786_s0 = inlined_call_operand.hbm [shape: bf16[128,128], index: 0, kind: input, shape index: {}]   ;;  %s787_s1 = inlined_call_operand.hbm [shape: bf16[128,128], index: 1, kind: input, shape index: {}]   ;;  %s788_s2 = inlined_call_operand.vmem [shape: f32[1,128], index: 2, kind: input, shape index: {}]   ;;  %s789_s3 = inlined_call_operand.hbm [shape: bf16[128,128], index: 3, kind: output, shape index: {}]  }
   0x1   :  { %9 = vsyncpa [#allocation7], 0 }
   0x2   :  { %10 = vsyncpa [#allocation5], 0  ;;  %s740_s12 = smov [#allocation3]  }
   0x3   :  { %s16_s13 = sshll.u32 %s740_s12, 4  ;;  %s17_s13 = int_to_ptr.vmem [resolvable:$true] %s16_s13 }
   0x4   :  { %s682_s14 = scalar_lea.vmem %s17_s13, 1024  ;;  %p687_p1 = scmp.lt.s32.totalorder %s17_s13, %s17_s13 }
   0x5   :  { %p683_p0 = scmp.ne.s32.totalorder %s17_s13, %s682_s14  ;;  %p688_p2 = scmp.lt.s32.totalorder %s682_s14, %s682_s14 }
   0x7   :  { %p689_p3 = por %p688_p2, %p687_p1 }
   0x9   :  { %p690_p4 = pnand %p689_p3, %p683_p0 }
   0xb   :  { %693 = shalt.err (!%p690_p4)
}
   0xc   :  { %s741_s15 = smov 64   ;;  %s742_s16 = smov 4  }
   0xd   :  { %22 = dma.hbm_to_vmem [thread:$0]  %s786_s0, 1024, %s17_s13, [#allocation4], %s741_s15, %s741_s15, %s742_s16  }
   0xe   :  { %s743_s19 = smov [#allocation6]  }
   0xf   :  { %s28_s20 = sshll.u32 %s743_s19, 4  ;;  %s29_s20 = int_to_ptr.vmem [resolvable:$true] %s28_s20 }
  0x10   :  { %s702_s21 = scalar_lea.vmem %s29_s20, 1024  ;;  %p707_p6 = scmp.lt.s32.totalorder %s29_s20, %s29_s20 }
  0x11   :  { %p703_p5 = scmp.ne.s32.totalorder %s29_s20, %s702_s21  ;;  %p708_p7 = scmp.lt.s32.totalorder %s702_s21, %s702_s21 }
  0x13   :  { %p709_p8 = por %p708_p7, %p707_p6 }
  0x15   :  { %p710_p9 = pnand %p709_p8, %p703_p5 }
  0x17   :  { %713 = shalt.err (!%p710_p9)
}
  0x18   :  { %34 = dma.hbm_to_vmem [thread:$0]  %s787_s1, 1024, %s29_s20, [#allocation7], %s741_s15, %s741_s15, %s742_s16  }
  0x19   :  { %734 = dma.done.wait [#allocation4], 1024  }
  0x1a   :  { %735 = vsyncadd [#allocation4], 4294966272 }
  0x1b   :  { %736 = dma.done.wait [#allocation7], 1024  }
  0x1c   :  { %737 = vsyncadd [#allocation7], 4294966272  ;;  %v658_v0 = vld [vmem:[#allocation6 + $0x38] sm:$0xff]   ;;  %v659_v1 = vld [vmem:[#allocation6 + $0x30] sm:$0xff]  }
  0x1d   :  { %605 = vmatprep.subr.bf16.mxu0 %v658_v0  ;;  %637 = vmatprep.subr.bf16.mxu1 %v658_v0  ;;  %v660_v2 = vld [vmem:[#allocation6 + $0x28] sm:$0xff]   ;;  %v661_v3 = vld [vmem:[#allocation6 + $0x20] sm:$0xff]   ;;  %v662_v6 = vld [vmem:[#allocation6 + $0x18] sm:$0xff]  }
  0x1e   :  { %606 = vmatpush3.bf16.msra.mxu0 %v658_v0  ;;  %645 = vmatpush3.bf16.msra.mxu1 %v658_v0  ;;  %v666_v4 = vld [vmem:[#allocation3] sm:$0xff]   ;;  %v663_v7 = vld [vmem:[#allocation6 + $0x10] sm:$0xff]   ;;  %v664_v8 = vld [vmem:[#allocation6 + $0x8] sm:$0xff]  }
  0x1f   :  { %607 = vmatprep.subr.bf16.mxu0 %v659_v1  ;;  %638 = vmatprep.subr.bf16.mxu1 %v659_v1  ;;  %v667_v5 = vld [vmem:[#allocation3 + $0x20] sm:$0xff]   ;;  %v668_v10 = vld [vmem:[#allocation3 + $0x8] sm:$0xff]   ;;  %v670_v12 = vld [vmem:[#allocation3 + $0x10] sm:$0xff]  }
  0x20   :  { %621 = vmatprep.mubr.bf16.mxu0 %v666_v4  ;;  %629 = vmatprep.mubr.bf16.mxu1 %v667_v5  ;;  %v665_v9 = vld [vmem:[#allocation6] sm:$0xff]   ;;  %v669_v11 = vld [vmem:[#allocation3 + $0x28] sm:$0xff]   ;;  %v671_v13 = vld [vmem:[#allocation3 + $0x30] sm:$0xff]  }
  0x21   :  { %v672_v14 = vld [vmem:[#allocation3 + $0x18] sm:$0xff]   ;;  %v509_v16 = vld [vmem:[%s788_s2] ss:$0 sm:$0xff]  ;;  %s744_s2 = smov [#allocation8]  }
  0x22   :  { %608 = vmatpush3.bf16.msra.mxu0 %v659_v1  ;;  %646 = vmatpush3.bf16.msra.mxu1 %v659_v1  ;;  %v673_v15 = vld [vmem:[#allocation3 + $0x38] sm:$0xff]   ;;  %s480_s24 = sshll.u32 %s744_s2, 4  ;;  %s481_s24 = int_to_ptr.vmem [resolvable:$true] %s480_s24 }
  0x23   :  { %609 = vmatprep.subr.bf16.mxu0 %v660_v2  ;;  %639 = vmatprep.subr.bf16.mxu1 %v660_v2  ;;  %s714_s25 = scalar_lea.vmem %s481_s24, 1024  ;;  %p719_p11 = scmp.lt.s32.totalorder %s481_s24, %s481_s24 }
  0x24   :  { %p715_p10 = scmp.ne.s32.totalorder %s481_s24, %s714_s25  ;;  %p720_p12 = scmp.lt.s32.totalorder %s714_s25, %s714_s25 }
  0x26   :  { %610 = vmatpush3.bf16.msra.mxu0 %v660_v2  ;;  %647 = vmatpush3.bf16.msra.mxu1 %v660_v2  ;;  %p721_p13 = por %p720_p12, %p719_p11 }
  0x27   :  { %611 = vmatprep.subr.bf16.mxu0 %v661_v3  ;;  %640 = vmatprep.subr.bf16.mxu1 %v661_v3 }
  0x28   :  { %p722_p0 = pnand %p721_p13, %p715_p10 }
  0x2a   :  { %612 = vmatpush3.bf16.msra.mxu0 %v661_v3  ;;  %648 = vmatpush3.bf16.msra.mxu1 %v661_v3 }
  0x2b   :  { %613 = vmatprep.subr.bf16.mxu0 %v662_v6  ;;  %641 = vmatprep.subr.bf16.mxu1 %v662_v6 }
  0x2e   :  { %614 = vmatpush3.bf16.msra.mxu0 %v662_v6  ;;  %649 = vmatpush3.bf16.msra.mxu1 %v662_v6 }
  0x2f   :  { %615 = vmatprep.subr.bf16.mxu0 %v663_v7  ;;  %642 = vmatprep.subr.bf16.mxu1 %v663_v7 }
  0x32   :  { %616 = vmatpush3.bf16.msra.mxu0 %v663_v7  ;;  %650 = vmatpush3.bf16.msra.mxu1 %v663_v7 }
  0x33   :  { %617 = vmatprep.subr.bf16.mxu0 %v664_v8  ;;  %643 = vmatprep.subr.bf16.mxu1 %v664_v8 }
  0x36   :  { %618 = vmatpush3.bf16.msra.mxu0 %v664_v8  ;;  %651 = vmatpush3.bf16.msra.mxu1 %v664_v8 }
  0x37   :  { %619 = vmatprep.subr.bf16.mxu0 %v665_v9  ;;  %644 = vmatprep.subr.bf16.mxu1 %v665_v9 }
  0x3a   :  { %620 = vmatpush3.bf16.msra.mxu0 %v665_v9  ;;  %652 = vmatpush3.bf16.msra.mxu1 %v665_v9 }
  0x3d   :  { %622 = vmatmul.mubr.bf16.vlgmr.msra.gmra.mxu0 %v668_v10  ;;  %630 = vmatmul.mubr.bf16.vlgmr.msra.gmra.mxu1 %v669_v11 }
  0x3e   :  { %625 = vmatprep.mubr.bf16.mxu0 %v670_v12  ;;  %633 = vmatprep.mubr.bf16.mxu1 %v671_v13 }
  0x45   :  { %626 = vmatmul.mubr.bf16.gmra.mxu0 %v672_v14  ;;  %634 = vmatmul.mubr.bf16.gmra.mxu1 %v673_v15 }
  0xfd   :  { %v623_v17 = vpop.f32.mrf.mxu0  ;;  %v631_v18 = vpop.f32.mrf.mxu1 }
  0xfe   :  { %v365_v19 = vadd.f32 %v623_v17, %v509_v16  ;;  %v373_v20 = vadd.f32 %v631_v18, %v509_v16 }
  0xff   :  { %v242_v21 = vpop.f32.mrf.mxu0  ;;  %v274_v22 = vpop.f32.mrf.mxu1 }
 0x100   :  { %v363_v23 = vadd.f32 %v509_v16, %v242_v21  ;;  %v371_v24 = vadd.f32 %v509_v16, %v274_v22  ;;  %v381_v29 = vmax.f32 %v365_v19, 0.0  ;;  %v389_v30 = vmax.f32 %v373_v20, 0.0 }
 0x101   :  { %v624_v25 = vpop.f32.mrf.mxu0  ;;  %v632_v26 = vpop.f32.mrf.mxu1 }
 0x102   :  { %v366_v27 = vadd.f32 %v624_v25, %v509_v16  ;;  %v374_v28 = vadd.f32 %v632_v26, %v509_v16  ;;  %v379_v37 = vmax.f32 %v363_v23, 0.0  ;;  %v387_v38 = vmax.f32 %v371_v24, 0.0 }
 0x103   :  { %v245_v31 = vpop.f32.mrf.mxu0  ;;  %v277_v32 = vpop.f32.mrf.mxu1 }
 0x104   :  { %v382_v33 = vmax.f32 %v366_v27, 0.0  ;;  %v390_v34 = vmax.f32 %v374_v28, 0.0  ;;  %v364_v35 = vadd.f32 %v509_v16, %v245_v31  ;;  %v372_v36 = vadd.f32 %v509_v16, %v277_v32 }
 0x105   :  { %v627_v39 = vpop.f32.mrf.mxu0  ;;  %v635_v40 = vpop.f32.mrf.mxu1 }
 0x106   :  { %v550_v41 = vpack.c.bf16 %v382_v33, %v381_v29  ;;  %v570_v42 = vpack.c.bf16 %v390_v34, %v389_v30  ;;  %v380_v43 = vmax.f32 %v364_v35, 0.0  ;;  %v388_v44 = vmax.f32 %v372_v36, 0.0 }
 0x107   :  { %v369_v45 = vadd.f32 %v627_v39, %v509_v16  ;;  %v377_v46 = vadd.f32 %v635_v40, %v509_v16  ;;  %v258_v47 = vpop.f32.mrf.mxu0  ;;  %v290_v48 = vpop.f32.mrf.mxu1 }
 0x108   :  { %582 = vst [vmem:[#allocation8 + $0x8] sm:$0xff] %v550_v41   ;;  %586 = vst [vmem:[#allocation8 + $0x28] sm:$0xff] %v570_v42   ;;  %v545_v49 = vpack.c.bf16 %v380_v43, %v379_v37  ;;  %v565_v50 = vpack.c.bf16 %v388_v44, %v387_v38  ;;  %v367_v51 = vadd.f32 %v509_v16, %v258_v47 }
 0x109   :  { %v375_v52 = vadd.f32 %v509_v16, %v290_v48  ;;  %v628_v53 = vpop.f32.mrf.mxu0  ;;  %v636_v54 = vpop.f32.mrf.mxu1  ;;  %v385_v57 = vmax.f32 %v369_v45, 0.0  ;;  %v393_v58 = vmax.f32 %v377_v46, 0.0 }
 0x10a   :  { %546 = vst [vmem:[#allocation8] sm:$0xff] %v545_v49   ;;  %585 = vst [vmem:[#allocation8 + $0x20] sm:$0xff] %v565_v50   ;;  %v370_v55 = vadd.f32 %v628_v53, %v509_v16  ;;  %v378_v56 = vadd.f32 %v636_v54, %v509_v16  ;;  %v383_v1 = vmax.f32 %v367_v51, 0.0 }
 0x10b   :  { %v261_v59 = vpop.f32.mrf.mxu0  ;;  %v293_v60 = vpop.f32.mrf.mxu1  ;;  %v391_v2 = vmax.f32 %v375_v52, 0.0 }
 0x10c   :  { %v386_v61 = vmax.f32 %v370_v55, 0.0  ;;  %v394_v62 = vmax.f32 %v378_v56, 0.0  ;;  %v368_v63 = vadd.f32 %v509_v16, %v261_v59  ;;  %v376_v0 = vadd.f32 %v509_v16, %v293_v60 }
 0x10e   :  { %v560_v3 = vpack.c.bf16 %v386_v61, %v385_v57  ;;  %v580_v4 = vpack.c.bf16 %v394_v62, %v393_v58  ;;  %v384_v5 = vmax.f32 %v368_v63, 0.0  ;;  %v392_v6 = vmax.f32 %v376_v0, 0.0 }
 0x110   :  { %584 = vst [vmem:[#allocation8 + $0x18] sm:$0xff] %v560_v3   ;;  %588 = vst [vmem:[#allocation8 + $0x38] sm:$0xff] %v580_v4   ;;  %v555_v7 = vpack.c.bf16 %v384_v5, %v383_v1  ;;  %v575_v8 = vpack.c.bf16 %v392_v6, %v391_v2 }
 0x112   :  { %583 = vst [vmem:[#allocation8 + $0x10] sm:$0xff] %v555_v7   ;;  %587 = vst [vmem:[#allocation8 + $0x30] sm:$0xff] %v575_v8  }
 0x113   :  { %725 = shalt.err (!%p722_p0)
}
 0x114   :  { %486 = dma.vmem_to_hbm [thread:$0]  %s481_s24, 1024, %s789_s3, [#allocation5], %s741_s15, %s741_s15, %s742_s16  }
 0x115   :  { %738 = dma.done.wait [#allocation5], 1024  }
 0x116   :  { %739 = vsyncadd [#allocation5], 4294966272 }
 0x117   :  { %490 = vsyncpa [#allocation4], 1 }
 0x118   :  { %491 = vsyncpa [#allocation7], 1 }
 0x119   :  { %492 = vsyncpa [#allocation5], 1 }

</bundles_post_ra>
